<compile_context>
chip_gen: v6e
topology: v6e:2x2x1
jax: 0.10.0
libtpu: 0.0.40
codegen_flags: <defaults>
</compile_context>

<pallas_src>
import functools

import jax
import jax.numpy as jnp
from jax import lax
from jax.experimental import pallas as pl
from jax.experimental.pallas import tpu as pltpu

# ---------------------------------------------------------------------------
# Model constants (from the PyTorch module)
# ---------------------------------------------------------------------------
CLAMP_MIN = -0.6
CLAMP_MAX = 0.6000000000000001
KH = KW = 2          # conv kernel size
PAD = 2              # conv padding
C_OUT = 3
C_IN = 1


def _round_up(x, m):
    return (x + m - 1) // m * m


def _conv_clamp_kernel(w_ref, b_ref, x_ref, o_ref, *scratch,
                       h_in, w_in, h_out, w_out, h_blk, w_blk, cmin, cmax):
    """All C_OUT channels of the padded 2x2 conv + clamp in one invocation.

    w_ref : (C_OUT*KH*KW,) f32 SMEM      flattened OIHW conv weights (C_IN=1)
    b_ref : (C_OUT,)       f32 SMEM
    x_ref : (1, 1, h_in, w_in) f32 VMEM  raw NCHW input (N = C_in = 1)
    o_ref : (C_OUT, h_out, w_out) f32 VMEM   exact-size output
    scratch: optionally one (h_blk, w_blk) f32 VMEM ref (fallback padding path)
    """
    x = x_ref[0, 0]                                   # (h_in, w_in)

    if not scratch:
        # Preferred: zero-backed lane-dense block built in value space
        # (no VMEM store->reload round trip). Raw plane sits at the origin.
        xb = jnp.concatenate(
            [x, jnp.zeros((h_in, w_blk - w_in), jnp.float32)], axis=1)
        xb = jnp.concatenate(
            [xb, jnp.zeros((h_blk - h_in, w_blk), jnp.float32)], axis=0)
    else:
        # Fallback: origin-aligned (plain masked vst) store into zeroed scratch.
        xp_ref, = scratch
        xp_ref[...] = jnp.zeros_like(xp_ref)
        xp_ref[0:h_in, 0:w_in] = x
        xb = xp_ref[...]

    # taps[kh][kw][i, j] == zero-padded x[i + kh - PAD, j + kw - PAD] for
    # (i, j) in [0, h_out) x [0, w_out):
    #   roll DOWN by (PAD - kh) and RIGHT by (PAD - kw); the rows/cols that
    #   wrap around come from the zero-backed region, so the conv padding is
    #   supplied by the wraparound for free (XLU slot, no relayout store).
    taps = []
    for kh in range(KH):
        xh = pltpu.roll(xb, PAD - kh, 0)
        row = []
        for kw in range(KW):
            tap = pltpu.roll(xh, PAD - kw, 1)
            row.append(tap[:h_out, :w_out])           # exact (h_out, w_out)
        taps.append(row)

    # Fully unrolled per-channel MAC: init from the first tap, bias folded
    # into the epilogue, clamp, exact-size store (no trailing XLA slice).
    for c in range(C_OUT):
        base = c * KH * KW
        acc = w_ref[base] * taps[0][0]
        for kh in range(KH):
            for kw in range(KW):
                if kh == 0 and kw == 0:
                    continue
                acc = acc + w_ref[base + kh * KW + kw] * taps[kh][kw]
        acc = acc + b_ref[c]
        acc = jnp.maximum(acc, cmin)                  # clamp_min
        acc = jnp.minimum(acc, cmax)                  # clamp_max
        o_ref[c, :, :] = acc


def _build_conv_clamp(h, w, value_space_pad):
    h_out = h + 2 * PAD - KH + 1        # 38
    w_out = w + 2 * PAD - KW + 1        # 38

    # Lane-dense block for the shifted-input construction: padded plane plus
    # wraparound zeros, rounded up to the (8, 128) vreg tile.
    h_blk = _round_up(h + 2 * PAD, 8)     # 40
    w_blk = _round_up(w + 2 * PAD, 128)   # 128

    kernel = functools.partial(
        _conv_clamp_kernel,
        h_in=h, w_in=w, h_out=h_out, w_out=w_out,
        h_blk=h_blk, w_blk=w_blk,
        cmin=float(CLAMP_MIN), cmax=float(CLAMP_MAX),
    )

    scratch = [] if value_space_pad else [pltpu.VMEM((h_blk, w_blk), jnp.float32)]

    return pl.pallas_call(
        kernel,
        out_shape=jax.ShapeDtypeStruct((C_OUT, h_out, w_out), jnp.float32),
        in_specs=[
            pl.BlockSpec(memory_space=pltpu.MemorySpace.SMEM),   # (12,) weights
            pl.BlockSpec(memory_space=pltpu.MemorySpace.SMEM),   # (3,)  bias
            pl.BlockSpec(memory_space=pltpu.MemorySpace.VMEM),   # (1,1,H,W) input
        ],
        out_specs=pl.BlockSpec(memory_space=pltpu.MemorySpace.VMEM),
        scratch_shapes=scratch,
        cost_estimate=pl.CostEstimate(
            flops=C_OUT * h_out * w_out * (2 * KH * KW),
            transcendentals=0,
            bytes_accessed=(h * w                       # input plane DMA in
                            + C_OUT * h_out * w_out     # exact output writeback
                            + C_OUT * (KH * KW + 1)     # params
                            ) * 4,
        ),
    )


def conv2d_clamp(x_nchw, weight, bias):
    """x_nchw: (1, 1, H, W) f32; weight: (3, 1, 2, 2); bias: (3,)."""
    n, cin, h, w = x_nchw.shape
    assert n == 1 and cin == C_IN, "kernel specialized to N=1, C_in=1"

    # Flat 1-D SMEM params (2-D/4-D SMEM would pad to (8,128) words);
    # reshape of an f32 array is metadata-only, no extra dispatch.
    w_flat = weight.astype(jnp.float32).reshape(C_OUT * C_IN * KH * KW)  # (12,)
    b_flat = bias.astype(jnp.float32)                                    # (3,)
    x_f32 = x_nchw.astype(jnp.float32)                                   # no-op on f32

    try:
        # Preferred: scratch-free, value-space padding inside the kernel.
        out = _build_conv_clamp(h, w, value_space_pad=True)(w_flat, b_flat, x_f32)
    except Exception:
        # Compile-safety fallback: proven VMEM-scratch padding path
        # (only differs by a small in-kernel store->reload round trip).
        out = _build_conv_clamp(h, w, value_space_pad=False)(w_flat, b_flat, x_f32)

    return out[None]   # (1, 3, 38, 38) NCHW — metadata-only reshape, no slice


def _reference(x_nchw, weight, bias):
    y = lax.conv_general_dilated(
        x_nchw, weight,
        window_strides=(1, 1),
        padding=((PAD, PAD), (PAD, PAD)),
        dimension_numbers=("NCHW", "OIHW", "NCHW"),
    ) + bias[None, :, None, None]
    y = jnp.maximum(y, CLAMP_MIN)
    y = jnp.minimum(y, CLAMP_MAX)
    return y


if __name__ == "__main__":
    key = jax.random.PRNGKey(0)
    kx, kw_, kb = jax.random.split(key, 3)

    # Input matching the module: (1, 1, 35, 35)
    x = jax.random.normal(kx, (1, 1, 35, 35), dtype=jnp.float32)

    # Deterministic Conv2d(1, 3, 2) parameters (uniform in [-1/sqrt(fan_in), +])
    fan_in = C_IN * KH * KW
    bound = 1.0 / (fan_in ** 0.5)
    weight = jax.random.uniform(kw_, (C_OUT, C_IN, KH, KW),
                                minval=-bound, maxval=bound, dtype=jnp.float32)
    bias = jax.random.uniform(kb, (C_OUT,),
                              minval=-bound, maxval=bound, dtype=jnp.float32)

    out = conv2d_clamp(x, weight, bias)
    out = jax.block_until_ready(out)

    ref = _reference(x, weight, bias)
    assert out.shape == (1, 3, 38, 38), out.shape
    assert jnp.allclose(out, ref, atol=1e-5, rtol=1e-5), "mismatch vs reference"

    print("KERNEL_OK")
</pallas_src>

<mosaic_0001>
module attributes {stable_mosaic.version = 11 : i64} {
  func.func @_conv_clamp_kernel(%arg0: memref<12xf32, #tpu.memory_space<smem>>, %arg1: memref<3xf32, #tpu.memory_space<smem>>, %arg2: memref<1x1x35x35xf32, #tpu.memory_space<vmem>>, %arg3: memref<3x38x38xf32, #tpu.memory_space<vmem>>) attributes {dimension_semantics = [], scalar_prefetch = 0 : i64, scratch_operands = 0 : i64, tpu.core_type = #tpu.core_type<tc>} {
    %c0 = arith.constant 0 : index
    %c0_0 = arith.constant 0 : index
    %c0_1 = arith.constant 0 : index
    %c0_2 = arith.constant 0 : index
    %0 = vector.load %arg2[%c0, %c0_0, %c0_1, %c0_2] : memref<1x1x35x35xf32, #tpu.memory_space<vmem>>, vector<1x1x35x35xf32>
    %1 = vector.shape_cast %0 : vector<1x1x35x35xf32> to vector<35x35xf32>
    %cst = arith.constant 0.000000e+00 : f32
    %2 = vector.broadcast %cst : f32 to vector<35x93xf32>
    %3 = tpu.concatenate %1, %2 in 1 : vector<35x35xf32>, vector<35x93xf32> -> vector<35x128xf32>
    %cst_3 = arith.constant 0.000000e+00 : f32
    %4 = vector.broadcast %cst_3 : f32 to vector<5x128xf32>
    %5 = tpu.concatenate %3, %4 in 0 : vector<35x128xf32>, vector<5x128xf32> -> vector<40x128xf32>
    %c2_i32 = arith.constant 2 : i32
    %6 = tpu.dynamic_rotate %5 by %c2_i32 dim 0 : vector<40x128xf32>, i32 -> vector<40x128xf32>
    %c2_i32_4 = arith.constant 2 : i32
    %7 = tpu.dynamic_rotate %6 by %c2_i32_4 dim 1 : vector<40x128xf32>, i32 -> vector<40x128xf32>
    %8 = vector.extract_strided_slice %7 {offsets = [0, 0], sizes = [38, 38], strides = [1, 1]} : vector<40x128xf32> to vector<38x38xf32>
    %c1_i32 = arith.constant 1 : i32
    %9 = tpu.dynamic_rotate %6 by %c1_i32 dim 1 : vector<40x128xf32>, i32 -> vector<40x128xf32>
    %10 = vector.extract_strided_slice %9 {offsets = [0, 0], sizes = [38, 38], strides = [1, 1]} : vector<40x128xf32> to vector<38x38xf32>
    %c1_i32_5 = arith.constant 1 : i32
    %11 = tpu.dynamic_rotate %5 by %c1_i32_5 dim 0 : vector<40x128xf32>, i32 -> vector<40x128xf32>
    %c2_i32_6 = arith.constant 2 : i32
    %12 = tpu.dynamic_rotate %11 by %c2_i32_6 dim 1 : vector<40x128xf32>, i32 -> vector<40x128xf32>
    %13 = vector.extract_strided_slice %12 {offsets = [0, 0], sizes = [38, 38], strides = [1, 1]} : vector<40x128xf32> to vector<38x38xf32>
    %c1_i32_7 = arith.constant 1 : i32
    %14 = tpu.dynamic_rotate %11 by %c1_i32_7 dim 1 : vector<40x128xf32>, i32 -> vector<40x128xf32>
    %15 = vector.extract_strided_slice %14 {offsets = [0, 0], sizes = [38, 38], strides = [1, 1]} : vector<40x128xf32> to vector<38x38xf32>
    %c0_8 = arith.constant 0 : index
    %16 = memref.load %arg0[%c0_8] : memref<12xf32, #tpu.memory_space<smem>>
    %17 = vector.broadcast %16 : f32 to vector<38x38xf32>
    %18 = arith.mulf %17, %8 : vector<38x38xf32>
    %c1 = arith.constant 1 : index
    %19 = memref.load %arg0[%c1] : memref<12xf32, #tpu.memory_space<smem>>
    %20 = vector.broadcast %19 : f32 to vector<38x38xf32>
    %21 = arith.mulf %20, %10 : vector<38x38xf32>
    %22 = arith.addf %18, %21 : vector<38x38xf32>
    %c2 = arith.constant 2 : index
    %23 = memref.load %arg0[%c2] : memref<12xf32, #tpu.memory_space<smem>>
    %24 = vector.broadcast %23 : f32 to vector<38x38xf32>
    %25 = arith.mulf %24, %13 : vector<38x38xf32>
    %26 = arith.addf %22, %25 : vector<38x38xf32>
    %c3 = arith.constant 3 : index
    %27 = memref.load %arg0[%c3] : memref<12xf32, #tpu.memory_space<smem>>
    %28 = vector.broadcast %27 : f32 to vector<38x38xf32>
    %29 = arith.mulf %28, %15 : vector<38x38xf32>
    %30 = arith.addf %26, %29 : vector<38x38xf32>
    %c0_9 = arith.constant 0 : index
    %31 = memref.load %arg1[%c0_9] : memref<3xf32, #tpu.memory_space<smem>>
    %32 = vector.broadcast %31 : f32 to vector<38x38xf32>
    %33 = arith.addf %30, %32 : vector<38x38xf32>
    %cst_10 = arith.constant -6.000000e-01 : f32
    %34 = vector.broadcast %cst_10 : f32 to vector<38x38xf32>
    %35 = arith.maximumf %33, %34 : vector<38x38xf32>
    %cst_11 = arith.constant 6.000000e-01 : f32
    %36 = vector.broadcast %cst_11 : f32 to vector<38x38xf32>
    %37 = arith.minimumf %35, %36 : vector<38x38xf32>
    %c0_12 = arith.constant 0 : index
    %c0_13 = arith.constant 0 : index
    %c0_14 = arith.constant 0 : index
    %38 = vector.load %arg3[%c0_12, %c0_13, %c0_14] : memref<3x38x38xf32, #tpu.memory_space<vmem>>, vector<1x38x38xf32>
    %39 = vector.shape_cast %38 : vector<1x38x38xf32> to vector<38x38xf32>
    %40 = vector.shape_cast %37 : vector<38x38xf32> to vector<1x38x38xf32>
    tpu.vector_store %arg3[%c0_12, %c0_13, %c0_14], %40 {strides = array<i32>} : memref<3x38x38xf32, #tpu.memory_space<vmem>>, vector<1x38x38xf32>,
    %c4 = arith.constant 4 : index
    %41 = memref.load %arg0[%c4] : memref<12xf32, #tpu.memory_space<smem>>
    %42 = vector.broadcast %41 : f32 to vector<38x38xf32>
    %43 = arith.mulf %42, %8 : vector<38x38xf32>
    %c5 = arith.constant 5 : index
    %44 = memref.load %arg0[%c5] : memref<12xf32, #tpu.memory_space<smem>>
    %45 = vector.broadcast %44 : f32 to vector<38x38xf32>
    %46 = arith.mulf %45, %10 : vector<38x38xf32>
    %47 = arith.addf %43, %46 : vector<38x38xf32>
    %c6 = arith.constant 6 : index
    %48 = memref.load %arg0[%c6] : memref<12xf32, #tpu.memory_space<smem>>
    %49 = vector.broadcast %48 : f32 to vector<38x38xf32>
    %50 = arith.mulf %49, %13 : vector<38x38xf32>
    %51 = arith.addf %47, %50 : vector<38x38xf32>
    %c7 = arith.constant 7 : index
    %52 = memref.load %arg0[%c7] : memref<12xf32, #tpu.memory_space<smem>>
    %53 = vector.broadcast %52 : f32 to vector<38x38xf32>
    %54 = arith.mulf %53, %15 : vector<38x38xf32>
    %55 = arith.addf %51, %54 : vector<38x38xf32>
    %c1_15 = arith.constant 1 : index
    %56 = memref.load %arg1[%c1_15] : memref<3xf32, #tpu.memory_space<smem>>
    %57 = vector.broadcast %56 : f32 to vector<38x38xf32>
    %58 = arith.addf %55, %57 : vector<38x38xf32>
    %cst_16 = arith.constant -6.000000e-01 : f32
    %59 = vector.broadcast %cst_16 : f32 to vector<38x38xf32>
    %60 = arith.maximumf %58, %59 : vector<38x38xf32>
    %cst_17 = arith.constant 6.000000e-01 : f32
    %61 = vector.broadcast %cst_17 : f32 to vector<38x38xf32>
    %62 = arith.minimumf %60, %61 : vector<38x38xf32>
    %c1_18 = arith.constant 1 : index
    %c0_19 = arith.constant 0 : index
    %c0_20 = arith.constant 0 : index
    %63 = vector.load %arg3[%c1_18, %c0_19, %c0_20] : memref<3x38x38xf32, #tpu.memory_space<vmem>>, vector<1x38x38xf32>
    %64 = vector.shape_cast %63 : vector<1x38x38xf32> to vector<38x38xf32>
    %65 = vector.shape_cast %62 : vector<38x38xf32> to vector<1x38x38xf32>
    tpu.vector_store %arg3[%c1_18, %c0_19, %c0_20], %65 {strides = array<i32>} : memref<3x38x38xf32, #tpu.memory_space<vmem>>, vector<1x38x38xf32>,
    %c8 = arith.constant 8 : index
    %66 = memref.load %arg0[%c8] : memref<12xf32, #tpu.memory_space<smem>>
    %67 = vector.broadcast %66 : f32 to vector<38x38xf32>
    %68 = arith.mulf %67, %8 : vector<38x38xf32>
    %c9 = arith.constant 9 : index
    %69 = memref.load %arg0[%c9] : memref<12xf32, #tpu.memory_space<smem>>
    %70 = vector.broadcast %69 : f32 to vector<38x38xf32>
    %71 = arith.mulf %70, %10 : vector<38x38xf32>
    %72 = arith.addf %68, %71 : vector<38x38xf32>
    %c10 = arith.constant 10 : index
    %73 = memref.load %arg0[%c10] : memref<12xf32, #tpu.memory_space<smem>>
    %74 = vector.broadcast %73 : f32 to vector<38x38xf32>
    %75 = arith.mulf %74, %13 : vector<38x38xf32>
    %76 = arith.addf %72, %75 : vector<38x38xf32>
    %c11 = arith.constant 11 : index
    %77 = memref.load %arg0[%c11] : memref<12xf32, #tpu.memory_space<smem>>
    %78 = vector.broadcast %77 : f32 to vector<38x38xf32>
    %79 = arith.mulf %78, %15 : vector<38x38xf32>
    %80 = arith.addf %76, %79 : vector<38x38xf32>
    %c2_21 = arith.constant 2 : index
    %81 = memref.load %arg1[%c2_21] : memref<3xf32, #tpu.memory_space<smem>>
    %82 = vector.broadcast %81 : f32 to vector<38x38xf32>
    %83 = arith.addf %80, %82 : vector<38x38xf32>
    %cst_22 = arith.constant -6.000000e-01 : f32
    %84 = vector.broadcast %cst_22 : f32 to vector<38x38xf32>
    %85 = arith.maximumf %83, %84 : vector<38x38xf32>
    %cst_23 = arith.constant 6.000000e-01 : f32
    %86 = vector.broadcast %cst_23 : f32 to vector<38x38xf32>
    %87 = arith.minimumf %85, %86 : vector<38x38xf32>
    %c2_24 = arith.constant 2 : index
    %c0_25 = arith.constant 0 : index
    %c0_26 = arith.constant 0 : index
    %88 = vector.load %arg3[%c2_24, %c0_25, %c0_26] : memref<3x38x38xf32, #tpu.memory_space<vmem>>, vector<1x38x38xf32>
    %89 = vector.shape_cast %88 : vector<1x38x38xf32> to vector<38x38xf32>
    %90 = vector.shape_cast %87 : vector<38x38xf32> to vector<1x38x38xf32>
    tpu.vector_store %arg3[%c2_24, %c0_25, %c0_26], %90 {strides = array<i32>} : memref<3x38x38xf32, #tpu.memory_space<vmem>>, vector<1x38x38xf32>,
    return
  }
}

module attributes {stable_mosaic.version = 11 : i64} {
  func.func @_conv_clamp_kernel(%arg0: memref<12xf32, #tpu.memory_space<smem>>, %arg1: memref<3xf32, #tpu.memory_space<smem>>, %arg2: memref<1x1x35x35xf32, #tpu.memory_space<vmem>>, %arg3: memref<3x38x38xf32, #tpu.memory_space<vmem>>, %arg4: memref<40x128xf32, #tpu.memory_space<vmem>>) attributes {dimension_semantics = [], scalar_prefetch = 0 : i64, scratch_operands = 1 : i64, tpu.core_type = #tpu.core_type<tc>} {
    %c0 = arith.constant 0 : index
    %c0_0 = arith.constant 0 : index
    %c0_1 = arith.constant 0 : index
    %c0_2 = arith.constant 0 : index
    %0 = vector.load %arg2[%c0, %c0_0, %c0_1, %c0_2] : memref<1x1x35x35xf32, #tpu.memory_space<vmem>>, vector<1x1x35x35xf32>
    %1 = vector.shape_cast %0 : vector<1x1x35x35xf32> to vector<35x35xf32>
    %cst = arith.constant 0.000000e+00 : f32
    %2 = vector.broadcast %cst : f32 to vector<40x128xf32>
    %c0_3 = arith.constant 0 : index
    %c0_4 = arith.constant 0 : index
    %3 = vector.load %arg4[%c0_3, %c0_4] : memref<40x128xf32, #tpu.memory_space<vmem>>, vector<40x128xf32>
    tpu.vector_store %arg4[%c0_3, %c0_4], %2 {strides = array<i32>} : memref<40x128xf32, #tpu.memory_space<vmem>>, vector<40x128xf32>,
    %c0_5 = arith.constant 0 : index
    %c0_6 = arith.constant 0 : index
    %4 = vector.load %arg4[%c0_5, %c0_6] : memref<40x128xf32, #tpu.memory_space<vmem>>, vector<35x35xf32>
    tpu.vector_store %arg4[%c0_5, %c0_6], %1 {strides = array<i32>} : memref<40x128xf32, #tpu.memory_space<vmem>>, vector<35x35xf32>,
    %c0_7 = arith.constant 0 : index
    %c0_8 = arith.constant 0 : index
    %5 = vector.load %arg4[%c0_7, %c0_8] : memref<40x128xf32, #tpu.memory_space<vmem>>, vector<40x128xf32>
    %c2_i32 = arith.constant 2 : i32
    %6 = tpu.dynamic_rotate %5 by %c2_i32 dim 0 : vector<40x128xf32>, i32 -> vector<40x128xf32>
    %c2_i32_9 = arith.constant 2 : i32
    %7 = tpu.dynamic_rotate %6 by %c2_i32_9 dim 1 : vector<40x128xf32>, i32 -> vector<40x128xf32>
    %8 = vector.extract_strided_slice %7 {offsets = [0, 0], sizes = [38, 38], strides = [1, 1]} : vector<40x128xf32> to vector<38x38xf32>
    %c1_i32 = arith.constant 1 : i32
    %9 = tpu.dynamic_rotate %6 by %c1_i32 dim 1 : vector<40x128xf32>, i32 -> vector<40x128xf32>
    %10 = vector.extract_strided_slice %9 {offsets = [0, 0], sizes = [38, 38], strides = [1, 1]} : vector<40x128xf32> to vector<38x38xf32>
    %c1_i32_10 = arith.constant 1 : i32
    %11 = tpu.dynamic_rotate %5 by %c1_i32_10 dim 0 : vector<40x128xf32>, i32 -> vector<40x128xf32>
    %c2_i32_11 = arith.constant 2 : i32
    %12 = tpu.dynamic_rotate %11 by %c2_i32_11 dim 1 : vector<40x128xf32>, i32 -> vector<40x128xf32>
    %13 = vector.extract_strided_slice %12 {offsets = [0, 0], sizes = [38, 38], strides = [1, 1]} : vector<40x128xf32> to vector<38x38xf32>
    %c1_i32_12 = arith.constant 1 : i32
    %14 = tpu.dynamic_rotate %11 by %c1_i32_12 dim 1 : vector<40x128xf32>, i32 -> vector<40x128xf32>
    %15 = vector.extract_strided_slice %14 {offsets = [0, 0], sizes = [38, 38], strides = [1, 1]} : vector<40x128xf32> to vector<38x38xf32>
    %c0_13 = arith.constant 0 : index
    %16 = memref.load %arg0[%c0_13] : memref<12xf32, #tpu.memory_space<smem>>
    %17 = vector.broadcast %16 : f32 to vector<38x38xf32>
    %18 = arith.mulf %17, %8 : vector<38x38xf32>
    %c1 = arith.constant 1 : index
    %19 = memref.load %arg0[%c1] : memref<12xf32, #tpu.memory_space<smem>>
    %20 = vector.broadcast %19 : f32 to vector<38x38xf32>
    %21 = arith.mulf %20, %10 : vector<38x38xf32>
    %22 = arith.addf %18, %21 : vector<38x38xf32>
    %c2 = arith.constant 2 : index
    %23 = memref.load %arg0[%c2] : memref<12xf32, #tpu.memory_space<smem>>
    %24 = vector.broadcast %23 : f32 to vector<38x38xf32>
    %25 = arith.mulf %24, %13 : vector<38x38xf32>
    %26 = arith.addf %22, %25 : vector<38x38xf32>
    %c3 = arith.constant 3 : index
    %27 = memref.load %arg0[%c3] : memref<12xf32, #tpu.memory_space<smem>>
    %28 = vector.broadcast %27 : f32 to vector<38x38xf32>
    %29 = arith.mulf %28, %15 : vector<38x38xf32>
    %30 = arith.addf %26, %29 : vector<38x38xf32>
    %c0_14 = arith.constant 0 : index
    %31 = memref.load %arg1[%c0_14] : memref<3xf32, #tpu.memory_space<smem>>
    %32 = vector.broadcast %31 : f32 to vector<38x38xf32>
    %33 = arith.addf %30, %32 : vector<38x38xf32>
    %cst_15 = arith.constant -6.000000e-01 : f32
    %34 = vector.broadcast %cst_15 : f32 to vector<38x38xf32>
    %35 = arith.maximumf %33, %34 : vector<38x38xf32>
    %cst_16 = arith.constant 6.000000e-01 : f32
    %36 = vector.broadcast %cst_16 : f32 to vector<38x38xf32>
    %37 = arith.minimumf %35, %36 : vector<38x38xf32>
    %c0_17 = arith.constant 0 : index
    %c0_18 = arith.constant 0 : index
    %c0_19 = arith.constant 0 : index
    %38 = vector.load %arg3[%c0_17, %c0_18, %c0_19] : memref<3x38x38xf32, #tpu.memory_space<vmem>>, vector<1x38x38xf32>
    %39 = vector.shape_cast %38 : vector<1x38x38xf32> to vector<38x38xf32>
    %40 = vector.shape_cast %37 : vector<38x38xf32> to vector<1x38x38xf32>
    tpu.vector_store %arg3[%c0_17, %c0_18, %c0_19], %40 {strides = array<i32>} : memref<3x38x38xf32, #tpu.memory_space<vmem>>, vector<1x38x38xf32>,
    %c4 = arith.constant 4 : index
    %41 = memref.load %arg0[%c4] : memref<12xf32, #tpu.memory_space<smem>>
    %42 = vector.broadcast %41 : f32 to vector<38x38xf32>
    %43 = arith.mulf %42, %8 : vector<38x38xf32>
    %c5 = arith.constant 5 : index
    %44 = memref.load %arg0[%c5] : memref<12xf32, #tpu.memory_space<smem>>
    %45 = vector.broadcast %44 : f32 to vector<38x38xf32>
    %46 = arith.mulf %45, %10 : vector<38x38xf32>
    %47 = arith.addf %43, %46 : vector<38x38xf32>
    %c6 = arith.constant 6 : index
    %48 = memref.load %arg0[%c6] : memref<12xf32, #tpu.memory_space<smem>>
    %49 = vector.broadcast %48 : f32 to vector<38x38xf32>
    %50 = arith.mulf %49, %13 : vector<38x38xf32>
    %51 = arith.addf %47, %50 : vector<38x38xf32>
    %c7 = arith.constant 7 : index
    %52 = memref.load %arg0[%c7] : memref<12xf32, #tpu.memory_space<smem>>
    %53 = vector.broadcast %52 : f32 to vector<38x38xf32>
    %54 = arith.mulf %53, %15 : vector<38x38xf32>
    %55 = arith.addf %51, %54 : vector<38x38xf32>
    %c1_20 = arith.constant 1 : index
    %56 = memref.load %arg1[%c1_20] : memref<3xf32, #tpu.memory_space<smem>>
    %57 = vector.broadcast %56 : f32 to vector<38x38xf32>
    %58 = arith.addf %55, %57 : vector<38x38xf32>
    %cst_21 = arith.constant -6.000000e-01 : f32
    %59 = vector.broadcast %cst_21 : f32 to vector<38x38xf32>
    %60 = arith.maximumf %58, %59 : vector<38x38xf32>
    %cst_22 = arith.constant 6.000000e-01 : f32
    %61 = vector.broadcast %cst_22 : f32 to vector<38x38xf32>
    %62 = arith.minimumf %60, %61 : vector<38x38xf32>
    %c1_23 = arith.constant 1 : index
    %c0_24 = arith.constant 0 : index
    %c0_25 = arith.constant 0 : index
    %63 = vector.load %arg3[%c1_23, %c0_24, %c0_25] : memref<3x38x38xf32, #tpu.memory_space<vmem>>, vector<1x38x38xf32>
    %64 = vector.shape_cast %63 : vector<1x38x38xf32> to vector<38x38xf32>
    %65 = vector.shape_cast %62 : vector<38x38xf32> to vector<1x38x38xf32>
    tpu.vector_store %arg3[%c1_23, %c0_24, %c0_25], %65 {strides = array<i32>} : memref<3x38x38xf32, #tpu.memory_space<vmem>>, vector<1x38x38xf32>,
    %c8 = arith.constant 8 : index
    %66 = memref.load %arg0[%c8] : memref<12xf32, #tpu.memory_space<smem>>
    %67 = vector.broadcast %66 : f32 to vector<38x38xf32>
    %68 = arith.mulf %67, %8 : vector<38x38xf32>
    %c9 = arith.constant 9 : index
    %69 = memref.load %arg0[%c9] : memref<12xf32, #tpu.memory_space<smem>>
    %70 = vector.broadcast %69 : f32 to vector<38x38xf32>
    %71 = arith.mulf %70, %10 : vector<38x38xf32>
    %72 = arith.addf %68, %71 : vector<38x38xf32>
    %c10 = arith.constant 10 : index
    %73 = memref.load %arg0[%c10] : memref<12xf32, #tpu.memory_space<smem>>
    %74 = vector.broadcast %73 : f32 to vector<38x38xf32>
    %75 = arith.mulf %74, %13 : vector<38x38xf32>
    %76 = arith.addf %72, %75 : vector<38x38xf32>
    %c11 = arith.constant 11 : index
    %77 = memref.load %arg0[%c11] : memref<12xf32, #tpu.memory_space<smem>>
    %78 = vector.broadcast %77 : f32 to vector<38x38xf32>
    %79 = arith.mulf %78, %15 : vector<38x38xf32>
    %80 = arith.addf %76, %79 : vector<38x38xf32>
    %c2_26 = arith.constant 2 : index
    %81 = memref.load %arg1[%c2_26] : memref<3xf32, #tpu.memory_space<smem>>
    %82 = vector.broadcast %81 : f32 to vector<38x38xf32>
    %83 = arith.addf %80, %82 : vector<38x38xf32>
    %cst_27 = arith.constant -6.000000e-01 : f32
    %84 = vector.broadcast %cst_27 : f32 to vector<38x38xf32>
    %85 = arith.maximumf %83, %84 : vector<38x38xf32>
    %cst_28 = arith.constant 6.000000e-01 : f32
    %86 = vector.broadcast %cst_28 : f32 to vector<38x38xf32>
    %87 = arith.minimumf %85, %86 : vector<38x38xf32>
    %c2_29 = arith.constant 2 : index
    %c0_30 = arith.constant 0 : index
    %c0_31 = arith.constant 0 : index
    %88 = vector.load %arg3[%c2_29, %c0_30, %c0_31] : memref<3x38x38xf32, #tpu.memory_space<vmem>>, vector<1x38x38xf32>
    %89 = vector.shape_cast %88 : vector<1x38x38xf32> to vector<38x38xf32>
    %90 = vector.shape_cast %87 : vector<38x38xf32> to vector<1x38x38xf32>
    tpu.vector_store %arg3[%c2_29, %c0_30, %c0_31], %90 {strides = array<i32>} : memref<3x38x38xf32, #tpu.memory_space<vmem>>, vector<1x38x38xf32>,
    return
  }
}

</mosaic_0001>

<bundles_post_ra>
// kernel: tpu_custom_call.1
= control target key start
LH: loop header
LB: loop body
LE: loop exit
PB: predicated region body
PF: predicated region fallthrough
CT: control target
= control target key end

     0   :  { %8 = vsyncpa [#allocation4], 0  ;;  %s567_s0 = inlined_call_operand.vmem [shape: f32[12], index: 0, kind: input, shape index: {}]   ;;  %s568_s1 = inlined_call_operand.vmem [shape: f32[3], index: 1, kind: input, shape index: {}]   ;;  %s569_s2 = inlined_call_operand.vmem [shape: f32[1,1,35,35], index: 2, kind: input, shape index: {}]   ;;  %s570_s3 = inlined_call_operand.hbm [shape: f32[3,38,38], index: 3, kind: output, shape index: {}]  }
   0x1   :  { %9 = vsyncpa [#allocation6], 0 }
   0x2   :  { %10 = vsyncpa [#allocation3], 0  ;;  %s17_s14 = sshll.u32 %s567_s0, 4  ;;  %s27_s17 = sshll.u32 %s568_s1, 4  ;;  %s18_s14 = int_to_ptr.vmem [resolvable:$true] %s17_s14  ;;  %s28_s17 = int_to_ptr.vmem [resolvable:$true] %s27_s17 }
   0x3   :  { %s369_s18 = scalar_lea.vmem %s18_s14, 16  ;;  %p374_p1 = scmp.lt.s32.totalorder %s18_s14, %s18_s14 }
   0x4   :  { %p370_p0 = scmp.ne.s32.totalorder %s18_s14, %s369_s18  ;;  %p375_p2 = scmp.lt.s32.totalorder %s369_s18, %s369_s18 }
   0x6   :  { %p376_p3 = por %p375_p2, %p374_p1 }
   0x8   :  { %p377_p4 = pnand %p376_p3, %p370_p0 }
   0xa   :  { %380 = shalt.err (!%p377_p4)
}
   0xb   :  { %s419_s19 = smov [#allocation2]   ;;  %s381_s20 = scalar_lea.vmem %s28_s17, 16 }
   0xc   :  { %20 = dma.vmem_to_smem %s18_s14, 16, %s419_s19, [#allocation4]  }
   0xd   :  { %p382_p5 = scmp.ne.s32.totalorder %s28_s17, %s381_s20  ;;  %p386_p6 = scmp.lt.s32.totalorder %s28_s17, %s28_s17 }
   0xe   :  { %p387_p7 = scmp.lt.s32.totalorder %s381_s20, %s381_s20 }
  0x10   :  { %p388_p8 = por %p387_p7, %p386_p6 }
  0x12   :  { %p389_p9 = pnand %p388_p8, %p382_p5 }
  0x14   :  { %392 = shalt.err (!%p389_p9)
}
  0x15   :  { %s420_s0 = smov [#allocation5]  }
  0x16   :  { %30 = dma.vmem_to_smem %s28_s17, 16, %s420_s0, [#allocation6]  }
  0x17   :  { %413 = dma.done.wait [#allocation4], 16  }
  0x18   :  { %414 = vsyncadd [#allocation4], 4294967280 }
  0x19   :  { %415 = dma.done.wait [#allocation6], 16  }
  0x1a   :  { %416 = vsyncadd [#allocation6], 4294967280 }
  0x1b   :  { %39 = sfence }
  0x1c   :  { %v41_v0 = vld [vmem:[%s569_s2 + $0x8] sm:$0xff]  ;;  %v42_v1 = vld [vmem:[%s569_s2 + $0x10] sm:$0xff]  ;;  %vm45_vm0 = vcmask 285696   ;;  %v58_v2 = vlaneseq  ;;  %v40_v3 = vld [vmem:[%s569_s2] sm:$0xff]  ;;  %vm51_vm1 = vcmask 1042432   ;;  %s421_s30 = smov 2  }
  0x1d   :  { %v47_v4 = vsel %vm45_vm0, %v41_v0, 0.0  ;;  %v48_v5 = vsel %vm45_vm0, %v42_v1, 0.0  ;;  %v44_v6 = vld [vmem:[%s569_s2 + $0x20] sm:$0x7]  ;;  %v46_v7 = vsel %vm45_vm0, %v40_v3, 0.0  ;;  %v43_v8 = vld [vmem:[%s569_s2 + $0x18] sm:$0xff] }
  0x1e   :  { %v54_v9 = vrot.slane %v47_v4, 6  ;;  %v55_v10 = vrot.slane %v48_v5, 6  ;;  %v59_v11 = vshrl.u32 %v58_v2, 7  ;;  %v50_v12 = vsel %vm45_vm0, %v44_v6, 0.0  ;;  %s422_s2 = smov 1   ;;  %s117_s4 = sld [smem:[#allocation2]] }
  0x1f   :  { %v52_v13 = vsel %vm51_vm1, %v50_v12, 0.0  ;;  %v53_v14 = vrot.slane %v46_v7, 6  ;;  %v49_v15 = vsel %vm45_vm0, %v43_v8, 0.0  ;;  %v86_v23 = vrot.slane %v46_v7, 7  ;;  %s342_s5 = sld [smem:[#allocation2 + $0x4]]  ;;  %s423_s19 = smov [#allocation7]  }
  0x20   :  { %vm60_vm2 = vcmp.lt.s32.totalorder %v59_v11, 2  ;;  %v57_v16 = vrot.slane %v52_v13, 6  ;;  %v56_v17 = vrot.slane %v49_v15, 6  ;;  %v87_v24 = vrot.slane %v47_v4, 7  ;;  %s352_s6 = sld [smem:[#allocation2 + $0x8]]  ;;  %s321_s20 = sshll.u32 %s423_s19, 4  ;;  %s322_s20 = int_to_ptr.vmem [resolvable:$true] %s321_s20 }
  0x21   :  { %v63_v18 = vsel %vm60_vm2, %v54_v9, %v55_v10  ;;  %v64_v21 = vsel %vm60_vm2, %v53_v14, %v54_v9  ;;  %vm91_vm3 = vcmp.lt.s32.totalorder %v59_v11, 1  ;;  %v90_v25 = vrot.slane %v52_v13, 7  ;;  %s334_s7 = sld [smem:[#allocation2 + $0x1]]  ;;  %s393_s0 = scalar_lea.vmem %s322_s20, 1920 }
  0x22   :  { %70 = vrot.lane.b32.xlu1 %v63_v18, %s421_s30  ;;  %v65_v19 = vsel %vm60_vm2, %v57_v16, %v53_v14  ;;  %v62_v20 = vsel %vm60_vm2, %v55_v10, %v56_v17  ;;  %v61_v22 = vsel %vm60_vm2, %v56_v17, %v57_v16  ;;  %v95_v26 = vsel %vm91_vm3, %v86_v23, %v87_v24  ;;  %s343_s8 = sld [smem:[#allocation2 + $0x5]]  ;;  %p394_p10 = scmp.ne.s32.totalorder %s322_s20, %s393_s0 }
  0x23   :  { %66 = vrot.lane.b32.xlu0 %v65_v19, %s421_s30  ;;  %v88_v27 = vrot.slane %v48_v5, 7  ;;  %v89_v28 = vrot.slane %v49_v15, 7  ;;  %v96_v29 = vsel %vm91_vm3, %v90_v25, %v86_v23  ;;  %s353_s9 = sld [smem:[#allocation2 + $0x9]]  ;;  %vm177_vm4 = vcmask 310272   ;;  %p398_p11 = scmp.lt.s32.totalorder %s322_s20, %s322_s20 }
  0x24   :  { %s335_s10 = sld [smem:[#allocation2 + $0x2]]  ;;  %v118_v38 = vstv %s117_s4  ;;  %vm182_vm5 = vcmask 308224   ;;  %p399_p12 = scmp.lt.s32.totalorder %s393_s0, %s393_s0 }
  0x25   :  { %v93_v30 = vsel %vm91_vm3, %v88_v27, %v89_v28  ;;  %v94_v31 = vsel %vm91_vm3, %v87_v24, %v88_v27  ;;  %v92_v32 = vsel %vm91_vm3, %v89_v28, %v90_v25  ;;  %s344_s11 = sld [smem:[#allocation2 + $0x6]]  ;;  %v185_v39 = vstv %s342_s5 }
  0x26   :  { %72 = vrot.lane.b32.xlu1 %v62_v20, %s421_s30  ;;  %s354_s12 = sld [smem:[#allocation2 + $0xa]]  ;;  %v251_v40 = vstv %s352_s6  ;;  %p400_p13 = por %p399_p12, %p398_p11 }
  0x27   :  { %68 = vrot.lane.b32.xlu0 %v64_v21, %s421_s30  ;;  %s336_s13 = sld [smem:[#allocation2 + $0x3]]  ;;  %v125_v41 = vstv %s334_s7 }
  0x28   :  { %s345_s14 = sld [smem:[#allocation2 + $0x7]]  ;;  %v192_v43 = vstv %s343_s8  ;;  %p401_p0 = pnand %p400_p13, %p394_p10 }
  0x29   :  { %s355_s15 = sld [smem:[#allocation2 + $0xb]]  ;;  %v258_v44 = vstv %s353_s9 }
  0x2a   :  { %76 = vrot.lane.b32.xlu1 %v65_v19, %s422_s2  ;;  %s160_s16 = sld [smem:[#allocation5]]  ;;  %v477_v45 = vstv %s335_s10 }
  0x2b   :  { %74 = vrot.lane.b32.xlu0 %v61_v22, %s421_s30  ;;  %s346_s17 = sld [smem:[#allocation5 + $0x1]]  ;;  %v479_v46 = vstv %s344_s11 }
  0x2c   :  { %s356_s18 = sld [smem:[#allocation5 + $0x2]]  ;;  %v481_v47 = vstv %s354_s12 }
  0x2d   :  { %v483_v48 = vstv %s336_s13 }
  0x2e   :  { %80 = vrot.lane.b32.xlu1 %v63_v18, %s422_s2  ;;  %v485_v49 = vstv %s345_s14 }
  0x2f   :  { %78 = vrot.lane.b32.xlu0 %v64_v21, %s422_s2  ;;  %v487_v50 = vstv %s355_s15 }
  0x30   :  { %v489_v53 = vstv %s160_s16 }
  0x31   :  { %v491_v54 = vstv %s346_s17 }
  0x32   :  { %84 = vrot.lane.b32.xlu1 %v61_v22, %s422_s2  ;;  %v493_v55 = vstv %s356_s18 }
  0x33   :  { %82 = vrot.lane.b32.xlu0 %v62_v20, %s422_s2 }
  0x36   :  { %99 = vrot.lane.b32.xlu1 %v95_v26, %s421_s30 }
  0x37   :  { %97 = vrot.lane.b32.xlu0 %v96_v29, %s421_s30 }
  0x3a   :  { %103 = vrot.lane.b32.xlu1 %v93_v30, %s421_s30 }
  0x3b   :  { %101 = vrot.lane.b32.xlu0 %v94_v31, %s421_s30 }
  0x3e   :  { %107 = vrot.lane.b32.xlu1 %v96_v29, %s422_s2 }
  0x3f   :  { %105 = vrot.lane.b32.xlu0 %v92_v32, %s421_s30 }
  0x42   :  { %111 = vrot.lane.b32.xlu1 %v94_v31, %s422_s2 }
  0x43   :  { %109 = vrot.lane.b32.xlu0 %v95_v26, %s422_s2 }
  0x46   :  { %115 = vrot.lane.b32.xlu1 %v92_v32, %s422_s2 }
  0x47   :  { %113 = vrot.lane.b32.xlu0 %v93_v30, %s422_s2 }
  0x94   :  { %v71_v33 = vpop.permute.xlu1 %70 }
  0x95   :  { %v67_v34 = vpop.permute.xlu0 %66  ;;  %v121_v51 = vmul.f32 %v118_v38, %v71_v33  ;;  %v188_v56 = vmul.f32 %v185_v39, %v71_v33  ;;  %v254_v57 = vmul.f32 %v251_v40, %v71_v33 }
  0x96   :  { %v119_v58 = vmul.f32 %v118_v38, %v67_v34  ;;  %v186_v59 = vmul.f32 %v185_v39, %v67_v34  ;;  %v252_v61 = vmul.f32 %v251_v40, %v67_v34 }
  0x98   :  { %v73_v35 = vpop.permute.xlu1 %72 }
  0x99   :  { %v69_v36 = vpop.permute.xlu0 %68  ;;  %v122_v62 = vmul.f32 %v118_v38, %v73_v35  ;;  %v189_v63 = vmul.f32 %v185_v39, %v73_v35  ;;  %v255_v1 = vmul.f32 %v251_v40, %v73_v35 }
  0x9a   :  { %v120_v5 = vmul.f32 %v118_v38, %v69_v36  ;;  %v187_v6 = vmul.f32 %v185_v39, %v69_v36  ;;  %v253_v7 = vmul.f32 %v251_v40, %v69_v36 }
  0x9c   :  { %v77_v37 = vpop.permute.xlu1 %76 }
  0x9d   :  { %v75_v42 = vpop.permute.xlu0 %74  ;;  %v126_v0 = vmul.f32 %v125_v41, %v77_v37  ;;  %v193_v2 = vmul.f32 %v192_v43, %v77_v37  ;;  %v259_v3 = vmul.f32 %v258_v44, %v77_v37 }
  0x9e   :  { %v123_v10 = vmul.f32 %v118_v38, %v75_v42  ;;  %v190_v16 = vmul.f32 %v185_v39, %v75_v42  ;;  %v256_v17 = vmul.f32 %v251_v40, %v75_v42 }
  0x9f   :  { %v131_v15 = vadd.f32 %v126_v0, %v119_v58  ;;  %v198_v19 = vadd.f32 %v193_v2, %v186_v59  ;;  %v264_v20 = vadd.f32 %v259_v3, %v252_v61 }
  0xa0   :  { %v81_v52 = vpop.permute.xlu1 %80 }
  0xa1   :  { %v79_v60 = vpop.permute.xlu0 %78  ;;  %v128_v4 = vmul.f32 %v125_v41, %v81_v52  ;;  %v195_v8 = vmul.f32 %v192_v43, %v81_v52  ;;  %v261_v11 = vmul.f32 %v258_v44, %v81_v52 }
  0xa2   :  { %v127_v12 = vmul.f32 %v125_v41, %v79_v60  ;;  %v194_v13 = vmul.f32 %v192_v43, %v79_v60  ;;  %v260_v18 = vmul.f32 %v258_v44, %v79_v60 }
  0xa3   :  { %v133_v21 = vadd.f32 %v128_v4, %v121_v51  ;;  %v200_v23 = vadd.f32 %v195_v8, %v188_v56  ;;  %v266_v28 = vadd.f32 %v261_v11, %v254_v57 }
  0xa4   :  { %v85_v9 = vpop.permute.xlu1 %84  ;;  %v132_v29 = vadd.f32 %v127_v12, %v120_v5  ;;  %v199_v30 = vadd.f32 %v194_v13, %v187_v6  ;;  %v265_v33 = vadd.f32 %v260_v18, %v253_v7 }
  0xa5   :  { %v83_v14 = vpop.permute.xlu0 %82  ;;  %v130_v22 = vmul.f32 %v125_v41, %v85_v9  ;;  %v197_v24 = vmul.f32 %v192_v43, %v85_v9  ;;  %v263_v25 = vmul.f32 %v258_v44, %v85_v9 }
  0xa6   :  { %v129_v26 = vmul.f32 %v125_v41, %v83_v14  ;;  %v196_v31 = vmul.f32 %v192_v43, %v83_v14  ;;  %v262_v34 = vmul.f32 %v258_v44, %v83_v14 }
  0xa7   :  { %v135_v37 = vadd.f32 %v130_v22, %v123_v10  ;;  %v202_v41 = vadd.f32 %v197_v24, %v190_v16  ;;  %v268_v42 = vadd.f32 %v263_v25, %v256_v17 }
  0xa8   :  { %v100_v27 = vpop.permute.xlu1 %99  ;;  %v134_v51 = vadd.f32 %v129_v26, %v122_v62  ;;  %v201_v56 = vadd.f32 %v196_v31, %v189_v63  ;;  %v267_v60 = vadd.f32 %v262_v34, %v255_v1 }
  0xa9   :  { %v98_v32 = vpop.permute.xlu0 %97  ;;  %v139_v35 = vmul.f32 %v477_v45, %v100_v27  ;;  %v206_v36 = vmul.f32 %v479_v46, %v100_v27  ;;  %v272_v38 = vmul.f32 %v481_v47, %v100_v27 }
  0xaa   :  { %v138_v39 = vmul.f32 %v477_v45, %v98_v32  ;;  %v205_v40 = vmul.f32 %v479_v46, %v98_v32  ;;  %v271_v52 = vmul.f32 %v481_v47, %v98_v32 }
  0xab   :  { %v144_v61 = vadd.f32 %v139_v35, %v132_v29  ;;  %v211_v0 = vadd.f32 %v206_v36, %v199_v30  ;;  %v277_v3 = vadd.f32 %v272_v38, %v265_v33 }
  0xac   :  { %v104_v43 = vpop.permute.xlu1 %103  ;;  %v143_v4 = vadd.f32 %v138_v39, %v131_v15  ;;  %v210_v62 = vadd.f32 %v205_v40, %v198_v19  ;;  %v276_v6 = vadd.f32 %v271_v52, %v264_v20 }
  0xad   :  { %v141_v44 = vmul.f32 %v477_v45, %v104_v43  ;;  %v208_v57 = vmul.f32 %v479_v46, %v104_v43  ;;  %v274_v58 = vmul.f32 %v481_v47, %v104_v43  ;;  %v102_v59 = vpop.permute.xlu0 %101 }
  0xae   :  { %v140_v2 = vmul.f32 %v477_v45, %v102_v59  ;;  %v207_v5 = vmul.f32 %v479_v46, %v102_v59  ;;  %v273_v8 = vmul.f32 %v481_v47, %v102_v59 }
  0xaf   :  { %v506_v63 = vadd.f32 %v141_v44, %v134_v51  ;;  %v508_v7 = vadd.f32 %v208_v57, %v201_v56  ;;  %v511_v10 = vadd.f32 %v274_v58, %v267_v60 }
  0xb0   :  { %v108_v9 = vpop.permute.xlu1 %107  ;;  %v145_v14 = vadd.f32 %v140_v2, %v133_v21  ;;  %v212_v18 = vadd.f32 %v207_v5, %v200_v23  ;;  %v278_v24 = vadd.f32 %v273_v8, %v266_v28 }
  0xb1   :  { %v150_v1 = vmul.f32 %v483_v48, %v108_v9  ;;  %v217_v11 = vmul.f32 %v485_v49, %v108_v9  ;;  %v283_v12 = vmul.f32 %v487_v50, %v108_v9  ;;  %v106_v13 = vpop.permute.xlu0 %105 }
  0xb2   :  { %v142_v15 = vmul.f32 %v477_v45, %v106_v13  ;;  %v209_v16 = vmul.f32 %v479_v46, %v106_v13  ;;  %v275_v17 = vmul.f32 %v481_v47, %v106_v13 }
  0xb3   :  { %v155_v19 = vadd.f32 %v150_v1, %v143_v4  ;;  %v222_v20 = vadd.f32 %v217_v11, %v210_v62  ;;  %v288_v22 = vadd.f32 %v283_v12, %v276_v6 }
  0xb4   :  { %v147_v25 = vadd.f32 %v142_v15, %v135_v37  ;;  %v214_v26 = vadd.f32 %v209_v16, %v202_v41  ;;  %v280_v27 = vadd.f32 %v275_v17, %v268_v42  ;;  %v112_v29 = vpop.permute.xlu1 %111 }
  0xb5   :  { %v162_v30 = vadd.f32 %v489_v53, %v155_v19  ;;  %v229_v31 = vadd.f32 %v491_v54, %v222_v20  ;;  %v295_v21 = vadd.f32 %v493_v55, %v288_v22  ;;  %v152_v45 = vmul.f32 %v483_v48, %v112_v29  ;;  %v110_v46 = vpop.permute.xlu0 %109 }
  0xb6   :  { %v219_v47 = vmul.f32 %v485_v49, %v112_v29  ;;  %v285_v23 = vmul.f32 %v487_v50, %v112_v29  ;;  %v151_v32 = vmul.f32 %v483_v48, %v110_v46  ;;  %v218_v28 = vmul.f32 %v485_v49, %v110_v46 }
  0xb7   :  { %v337_v33 = vclamps-f32 %v162_v30, 0.6  ;;  %v347_v34 = vclamps-f32 %v229_v31, 0.6  ;;  %v357_v35 = vclamps-f32 %v295_v21, 0.6  ;;  %v157_v36 = vadd.f32 %v152_v45, %v145_v14 }
  0xb8   :  { %v224_v37 = vadd.f32 %v219_v47, %v212_v18  ;;  %v290_v38 = vadd.f32 %v285_v23, %v278_v24  ;;  %v156_v39 = vadd.f32 %v151_v32, %v144_v61  ;;  %v223_v40 = vadd.f32 %v218_v28, %v211_v0  ;;  %v116_v41 = vpop.permute.xlu1 %115 }
  0xb9   :  { %178 = vst.msk [vmem:[#allocation7] sm:$0xff] %vm177_vm4, %v337_v33  ;;  %245 = vst.msk [vmem:[#allocation7 + $0x28] sm:$0xff] %vm177_vm4, %v347_v34  ;;  %v164_v42 = vadd.f32 %v489_v53, %v157_v36  ;;  %v284_v51 = vmul.f32 %v487_v50, %v110_v46  ;;  %v154_v52 = vmul.f32 %v483_v48, %v116_v41  ;;  %v114_v2 = vpop.permute.xlu0 %113 }
  0xba   :  { %311 = vst.msk [vmem:[#allocation7 + $0x50] sm:$0xff] %vm177_vm4, %v357_v35  ;;  %v221_v43 = vmul.f32 %v485_v49, %v116_v41  ;;  %v231_v56 = vadd.f32 %v491_v54, %v224_v37  ;;  %v297_v44 = vadd.f32 %v493_v55, %v290_v38  ;;  %v163_v57 = vadd.f32 %v489_v53, %v156_v39 }
  0xbb   :  { %v230_v58 = vadd.f32 %v491_v54, %v223_v40  ;;  %v339_v59 = vclamps-f32 %v164_v42, 0.6  ;;  %v289_v60 = vadd.f32 %v284_v51, %v277_v3  ;;  %v159_v61 = vadd.f32 %v154_v52, %v147_v25 }
  0xbc   :  { %v226_v0 = vadd.f32 %v221_v43, %v214_v26  ;;  %v349_v4 = vclamps-f32 %v231_v56, 0.6  ;;  %v359_v62 = vclamps-f32 %v297_v44, 0.6  ;;  %v338_v5 = vclamps-f32 %v163_v57, 0.6 }
  0xbd   :  { %v287_v6 = vmul.f32 %v487_v50, %v116_v41  ;;  %180 = vst.msk [vmem:[#allocation7 + $0x10] sm:$0xff] %vm177_vm4, %v339_v59  ;;  %v348_v8 = vclamps-f32 %v230_v58, 0.6  ;;  %v296_v9 = vadd.f32 %v493_v55, %v289_v60  ;;  %v166_v1 = vadd.f32 %v489_v53, %v159_v61 }
  0xbe   :  { %v233_v11 = vadd.f32 %v491_v54, %v226_v0  ;;  %247 = vst.msk [vmem:[#allocation7 + $0x38] sm:$0xff] %vm177_vm4, %v349_v4  ;;  %313 = vst.msk [vmem:[#allocation7 + $0x60] sm:$0xff] %vm177_vm4, %v359_v62  ;;  %v153_v12 = vmul.f32 %v483_v48, %v114_v2  ;;  %v220_v13 = vmul.f32 %v485_v49, %v114_v2 }
  0xbf   :  { %179 = vst.msk [vmem:[#allocation7 + $0x8] sm:$0xff] %vm177_vm4, %v338_v5  ;;  %v292_v3 = vadd.f32 %v287_v6, %v280_v27  ;;  %v286_v14 = vmul.f32 %v487_v50, %v114_v2  ;;  %246 = vst.msk [vmem:[#allocation7 + $0x30] sm:$0xff] %vm177_vm4, %v348_v8  ;;  %v358_v15 = vclamps-f32 %v296_v9, 0.6  ;;  %v341_v16 = vclamps-f32 %v166_v1, 0.6 }
  0xc0   :  { %v351_v17 = vclamps-f32 %v233_v11, 0.6  ;;  %v158_v19 = vadd.f32 %v153_v12, %v506_v63  ;;  %v225_v20 = vadd.f32 %v220_v13, %v508_v7 }
  0xc1   :  { %v299_v18 = vadd.f32 %v493_v55, %v292_v3  ;;  %v291_v22 = vadd.f32 %v286_v14, %v511_v10  ;;  %312 = vst.msk [vmem:[#allocation7 + $0x58] sm:$0xff] %vm177_vm4, %v358_v15 }
  0xc2   :  { %183 = vst.msk [vmem:[#allocation7 + $0x20] sm:$0x3f] %vm182_vm5, %v341_v16  ;;  %249 = vst.msk [vmem:[#allocation7 + $0x48] sm:$0x3f] %vm182_vm5, %v351_v17  ;;  %v165_v49 = vadd.f32 %v489_v53, %v158_v19  ;;  %v232_v50 = vadd.f32 %v491_v54, %v225_v20 }
  0xc3   :  { %v361_v48 = vclamps-f32 %v299_v18, 0.6  ;;  %v298_v24 = vadd.f32 %v493_v55, %v291_v22 }
  0xc4   :  { %v340_v63 = vclamps-f32 %v165_v49, 0.6  ;;  %v350_v7 = vclamps-f32 %v232_v50, 0.6 }
  0xc5   :  { %315 = vst.msk [vmem:[#allocation7 + $0x70] sm:$0x3f] %vm182_vm5, %v361_v48  ;;  %v360_v10 = vclamps-f32 %v298_v24, 0.6 }
  0xc6   :  { %181 = vst.msk [vmem:[#allocation7 + $0x18] sm:$0xff] %vm177_vm4, %v340_v63  ;;  %248 = vst.msk [vmem:[#allocation7 + $0x40] sm:$0xff] %vm177_vm4, %v350_v7 }
  0xc7   :  { %314 = vst.msk [vmem:[#allocation7 + $0x68] sm:$0xff] %vm177_vm4, %v360_v10 }
  0xc8   :  { %404 = shalt.err (!%p401_p0)
}
  0xc9   :  { %s424_s1 = smov 128   ;;  %s425_s21 = smov 8  }
  0xca   :  { %327 = dma.vmem_to_hbm [thread:$0]  %s322_s20, 1920, %s570_s3, [#allocation3], %s424_s1, %s424_s1, %s425_s21  }
  0xcb   :  { %417 = dma.done.wait [#allocation3], 1920  }
  0xcc   :  { %418 = vsyncadd [#allocation3], 4294965376 }
  0xcd   :  { %331 = vsyncpa [#allocation3], 1 }
  0xce   :  { %332 = vsyncpa [#allocation4], 1 }
  0xcf   :  { %333 = vsyncpa [#allocation6], 1 }

// kernel: tpu_custom_call.1
= control target key start
LH: loop header
LB: loop body
LE: loop exit
PB: predicated region body
PF: predicated region fallthrough
CT: control target
= control target key end

     0   :  { %8 = vsyncpa [#allocation5], 0  ;;  %s587_s0 = inlined_call_operand.vmem [shape: f32[12], index: 0, kind: input, shape index: {}]   ;;  %s588_s1 = inlined_call_operand.vmem [shape: f32[3], index: 1, kind: input, shape index: {}]   ;;  %s589_s2 = inlined_call_operand.vmem [shape: f32[1,1,35,35], index: 2, kind: input, shape index: {}]   ;;  %s590_s3 = inlined_call_operand.hbm [shape: f32[3,38,38], index: 3, kind: output, shape index: {}]  }
   0x1   :  { %9 = vsyncpa [#allocation7], 0 }
   0x2   :  { %10 = vsyncpa [#allocation4], 0  ;;  %s17_s14 = sshll.u32 %s587_s0, 4  ;;  %s27_s17 = sshll.u32 %s588_s1, 4  ;;  %s18_s14 = int_to_ptr.vmem [resolvable:$true] %s17_s14  ;;  %s28_s17 = int_to_ptr.vmem [resolvable:$true] %s27_s17 }
   0x3   :  { %s379_s18 = scalar_lea.vmem %s18_s14, 16  ;;  %p384_p1 = scmp.lt.s32.totalorder %s18_s14, %s18_s14 }
   0x4   :  { %p380_p0 = scmp.ne.s32.totalorder %s18_s14, %s379_s18  ;;  %p385_p2 = scmp.lt.s32.totalorder %s379_s18, %s379_s18 }
   0x6   :  { %p386_p3 = por %p385_p2, %p384_p1 }
   0x8   :  { %p387_p4 = pnand %p386_p3, %p380_p0 }
   0xa   :  { %390 = shalt.err (!%p387_p4)
}
   0xb   :  { %s429_s19 = smov [#allocation3]   ;;  %s391_s20 = scalar_lea.vmem %s28_s17, 16 }
   0xc   :  { %20 = dma.vmem_to_smem %s18_s14, 16, %s429_s19, [#allocation5]  }
   0xd   :  { %p392_p5 = scmp.ne.s32.totalorder %s28_s17, %s391_s20  ;;  %p396_p6 = scmp.lt.s32.totalorder %s28_s17, %s28_s17 }
   0xe   :  { %p397_p7 = scmp.lt.s32.totalorder %s391_s20, %s391_s20 }
  0x10   :  { %p398_p8 = por %p397_p7, %p396_p6 }
  0x12   :  { %p399_p9 = pnand %p398_p8, %p392_p5 }
  0x14   :  { %402 = shalt.err (!%p399_p9)
}
  0x15   :  { %s430_s0 = smov [#allocation6]  }
  0x16   :  { %30 = dma.vmem_to_smem %s28_s17, 16, %s430_s0, [#allocation7]  }
  0x17   :  { %423 = dma.done.wait [#allocation5], 16  }
  0x18   :  { %424 = vsyncadd [#allocation5], 4294967280 }
  0x19   :  { %425 = dma.done.wait [#allocation7], 16  }
  0x1a   :  { %426 = vsyncadd [#allocation7], 4294967280 }
  0x1b   :  { %39 = sfence }
  0x1c   :  { %v41_v0 = vld [vmem:[%s589_s2 + $0x8] sm:$0xff]  ;;  %v42_v1 = vld [vmem:[%s589_s2 + $0x10] sm:$0xff]  ;;  %vm50_vm0 = vcmask 285696   ;;  %v40_v2 = vld [vmem:[%s589_s2] sm:$0xff]  ;;  %v431_v3 = vmov 0.0   ;;  %v67_v4 = vlaneseq  ;;  %vm55_vm1 = vcmask 280576  }
  0x1d   :  { %46 = vst [vmem:[#allocation2 + $0x8] sm:$0xff] %v431_v3  ;;  %47 = vst [vmem:[#allocation2 + $0x10] sm:$0xff] %v431_v3  ;;  %v44_v5 = vld [vmem:[%s589_s2 + $0x20] sm:$0x7]  ;;  %v43_v6 = vld [vmem:[%s589_s2 + $0x18] sm:$0xff]  ;;  %s432_s2 = smov 2  }
  0x1e   :  { %45 = vst [vmem:[#allocation2] sm:$0xff] %v431_v3  ;;  %48 = vst [vmem:[#allocation2 + $0x18] sm:$0xff] %v431_v3  ;;  %v68_v7 = vshrl.u32 %v67_v4, 7  ;;  %s433_s30 = smov 1   ;;  %s126_s4 = sld [smem:[#allocation3]]  ;;  %vm186_vm4 = vcmask 310272  }
  0x1f   :  { %49 = vst [vmem:[#allocation2 + $0x20] sm:$0xff] %v431_v3  ;;  %52 = vst.msk [vmem:[#allocation2 + $0x8] sm:$0xff] %vm50_vm0, %v41_v0  ;;  %s351_s5 = sld [smem:[#allocation3 + $0x4]]  ;;  %vm191_vm5 = vcmask 308224   ;;  %s434_s19 = smov [#allocation8]  }
  0x20   :  { %53 = vst.msk [vmem:[#allocation2 + $0x10] sm:$0xff] %vm50_vm0, %v42_v1  ;;  %51 = vst.msk [vmem:[#allocation2] sm:$0xff] %vm50_vm0, %v40_v2  ;;  %vm69_vm2 = vcmp.lt.s32.totalorder %v68_v7, 2  ;;  %vm100_vm3 = vcmp.lt.s32.totalorder %v68_v7, 1  ;;  %s361_s6 = sld [smem:[#allocation3 + $0x8]]  ;;  %s330_s20 = sshll.u32 %s434_s19, 4  ;;  %s331_s20 = int_to_ptr.vmem [resolvable:$true] %s330_s20 }
  0x21   :  { %56 = vst.msk [vmem:[#allocation2 + $0x20] sm:$0x7] %vm55_vm1, %v44_v5  ;;  %s343_s7 = sld [smem:[#allocation3 + $0x1]]  ;;  %s403_s0 = scalar_lea.vmem %s331_s20, 1920 }
  0x22   :  { %54 = vst.msk [vmem:[#allocation2 + $0x18] sm:$0xff] %vm50_vm0, %v43_v6  ;;  %s352_s8 = sld [smem:[#allocation3 + $0x5]]  ;;  %p404_p10 = scmp.ne.s32.totalorder %s331_s20, %s403_s0 }
  0x23   :  { %s362_s9 = sld [smem:[#allocation3 + $0x9]]  ;;  %p408_p11 = scmp.lt.s32.totalorder %s331_s20, %s331_s20 }
  0x24   :  { %s344_s10 = sld [smem:[#allocation3 + $0x2]]  ;;  %v127_v38 = vstv %s126_s4  ;;  %p409_p12 = scmp.lt.s32.totalorder %s403_s0, %s403_s0 }
  0x25   :  { %s353_s11 = sld [smem:[#allocation3 + $0x6]]  ;;  %v194_v39 = vstv %s351_s5 }
  0x26   :  { %v58_v8 = vld [vmem:[#allocation2 + $0x8] sm:$0xff]  ;;  %s363_s12 = sld [smem:[#allocation3 + $0xa]]  ;;  %v260_v40 = vstv %s361_s6  ;;  %p410_p13 = por %p409_p12, %p408_p11 }
  0x27   :  { %v59_v9 = vld [vmem:[#allocation2 + $0x10] sm:$0xff]  ;;  %v57_v10 = vld [vmem:[#allocation2] sm:$0xff]  ;;  %v63_v11 = vrot.slane %v58_v8, 6  ;;  %v96_v24 = vrot.slane %v58_v8, 7  ;;  %s345_s13 = sld [smem:[#allocation3 + $0x3]]  ;;  %v134_v41 = vstv %s343_s7 }
  0x28   :  { %v64_v12 = vrot.slane %v59_v9, 6  ;;  %v61_v13 = vld [vmem:[#allocation2 + $0x20] sm:$0xff]  ;;  %v62_v14 = vrot.slane %v57_v10, 6  ;;  %v95_v23 = vrot.slane %v57_v10, 7  ;;  %v97_v27 = vrot.slane %v59_v9, 7  ;;  %s354_s14 = sld [smem:[#allocation3 + $0x7]]  ;;  %p411_p0 = pnand %p410_p13, %p404_p10 }
  0x29   :  { %v60_v15 = vld [vmem:[#allocation2 + $0x18] sm:$0xff]  ;;  %v66_v16 = vrot.slane %v61_v13, 6  ;;  %v99_v25 = vrot.slane %v61_v13, 7  ;;  %s364_s15 = sld [smem:[#allocation3 + $0xb]]  ;;  %v201_v43 = vstv %s352_s8  ;;  %v267_v44 = vstv %s362_s9 }
  0x2a   :  { %v65_v17 = vrot.slane %v60_v15, 6  ;;  %v72_v18 = vsel %vm69_vm2, %v63_v11, %v64_v12  ;;  %v73_v21 = vsel %vm69_vm2, %v62_v14, %v63_v11  ;;  %v104_v26 = vsel %vm100_vm3, %v95_v23, %v96_v24  ;;  %s169_s16 = sld [smem:[#allocation6]] }
  0x2b   :  { %79 = vrot.lane.b32.xlu1 %v72_v18, %s432_s2  ;;  %v74_v19 = vsel %vm69_vm2, %v66_v16, %v62_v14  ;;  %v98_v28 = vrot.slane %v60_v15, 7  ;;  %v105_v29 = vsel %vm100_vm3, %v99_v25, %v95_v23  ;;  %v103_v31 = vsel %vm100_vm3, %v96_v24, %v97_v27  ;;  %s355_s17 = sld [smem:[#allocation6 + $0x1]] }
  0x2c   :  { %75 = vrot.lane.b32.xlu0 %v74_v19, %s432_s2  ;;  %v71_v20 = vsel %vm69_vm2, %v64_v12, %v65_v17  ;;  %v70_v22 = vsel %vm69_vm2, %v65_v17, %v66_v16  ;;  %s365_s18 = sld [smem:[#allocation6 + $0x2]]  ;;  %v497_v45 = vstv %s344_s10  ;;  %v499_v46 = vstv %s353_s11 }
  0x2d   :  { %v102_v30 = vsel %vm100_vm3, %v97_v27, %v98_v28  ;;  %v101_v32 = vsel %vm100_vm3, %v98_v28, %v99_v25  ;;  %v501_v47 = vstv %s363_s12  ;;  %v503_v48 = vstv %s345_s13 }
  0x2e   :  { %v505_v49 = vstv %s354_s14 }
  0x2f   :  { %81 = vrot.lane.b32.xlu1 %v71_v20, %s432_s2  ;;  %v507_v50 = vstv %s364_s15 }
  0x30   :  { %77 = vrot.lane.b32.xlu0 %v73_v21, %s432_s2  ;;  %v509_v53 = vstv %s169_s16 }
  0x31   :  { %v511_v54 = vstv %s355_s17 }
  0x32   :  { %v513_v55 = vstv %s365_s18 }
  0x33   :  { %85 = vrot.lane.b32.xlu1 %v74_v19, %s433_s30 }
  0x34   :  { %83 = vrot.lane.b32.xlu0 %v70_v22, %s432_s2 }
  0x37   :  { %89 = vrot.lane.b32.xlu1 %v72_v18, %s433_s30 }
  0x38   :  { %87 = vrot.lane.b32.xlu0 %v73_v21, %s433_s30 }
  0x3b   :  { %93 = vrot.lane.b32.xlu1 %v70_v22, %s433_s30 }
  0x3c   :  { %91 = vrot.lane.b32.xlu0 %v71_v20, %s433_s30 }
  0x3f   :  { %108 = vrot.lane.b32.xlu1 %v104_v26, %s432_s2 }
  0x40   :  { %106 = vrot.lane.b32.xlu0 %v105_v29, %s432_s2 }
  0x43   :  { %112 = vrot.lane.b32.xlu1 %v102_v30, %s432_s2 }
  0x44   :  { %110 = vrot.lane.b32.xlu0 %v103_v31, %s432_s2 }
  0x47   :  { %116 = vrot.lane.b32.xlu1 %v105_v29, %s433_s30 }
  0x48   :  { %114 = vrot.lane.b32.xlu0 %v101_v32, %s432_s2 }
  0x4b   :  { %120 = vrot.lane.b32.xlu1 %v103_v31, %s433_s30 }
  0x4c   :  { %118 = vrot.lane.b32.xlu0 %v104_v26, %s433_s30 }
  0x4f   :  { %124 = vrot.lane.b32.xlu1 %v101_v32, %s433_s30 }
  0x50   :  { %122 = vrot.lane.b32.xlu0 %v102_v30, %s433_s30 }
  0x9d   :  { %v80_v33 = vpop.permute.xlu1 %79 }
  0x9e   :  { %v76_v34 = vpop.permute.xlu0 %75  ;;  %v130_v51 = vmul.f32 %v127_v38, %v80_v33  ;;  %v197_v56 = vmul.f32 %v194_v39, %v80_v33  ;;  %v263_v57 = vmul.f32 %v260_v40, %v80_v33 }
  0x9f   :  { %v128_v58 = vmul.f32 %v127_v38, %v76_v34  ;;  %v195_v59 = vmul.f32 %v194_v39, %v76_v34  ;;  %v261_v61 = vmul.f32 %v260_v40, %v76_v34 }
  0xa1   :  { %v82_v35 = vpop.permute.xlu1 %81 }
  0xa2   :  { %v78_v36 = vpop.permute.xlu0 %77  ;;  %v131_v62 = vmul.f32 %v127_v38, %v82_v35  ;;  %v198_v63 = vmul.f32 %v194_v39, %v82_v35  ;;  %v264_v1 = vmul.f32 %v260_v40, %v82_v35 }
  0xa3   :  { %v129_v5 = vmul.f32 %v127_v38, %v78_v36  ;;  %v196_v6 = vmul.f32 %v194_v39, %v78_v36  ;;  %v262_v7 = vmul.f32 %v260_v40, %v78_v36 }
  0xa5   :  { %v86_v37 = vpop.permute.xlu1 %85 }
  0xa6   :  { %v84_v42 = vpop.permute.xlu0 %83  ;;  %v135_v0 = vmul.f32 %v134_v41, %v86_v37  ;;  %v202_v2 = vmul.f32 %v201_v43, %v86_v37  ;;  %v268_v3 = vmul.f32 %v267_v44, %v86_v37 }
  0xa7   :  { %v132_v10 = vmul.f32 %v127_v38, %v84_v42  ;;  %v199_v16 = vmul.f32 %v194_v39, %v84_v42  ;;  %v265_v17 = vmul.f32 %v260_v40, %v84_v42 }
  0xa8   :  { %v140_v15 = vadd.f32 %v135_v0, %v128_v58  ;;  %v207_v19 = vadd.f32 %v202_v2, %v195_v59  ;;  %v273_v20 = vadd.f32 %v268_v3, %v261_v61 }
  0xa9   :  { %v90_v52 = vpop.permute.xlu1 %89 }
  0xaa   :  { %v88_v60 = vpop.permute.xlu0 %87  ;;  %v137_v4 = vmul.f32 %v134_v41, %v90_v52  ;;  %v204_v8 = vmul.f32 %v201_v43, %v90_v52  ;;  %v270_v11 = vmul.f32 %v267_v44, %v90_v52 }
  0xab   :  { %v136_v12 = vmul.f32 %v134_v41, %v88_v60  ;;  %v203_v13 = vmul.f32 %v201_v43, %v88_v60  ;;  %v269_v18 = vmul.f32 %v267_v44, %v88_v60 }
  0xac   :  { %v142_v21 = vadd.f32 %v137_v4, %v130_v51  ;;  %v209_v23 = vadd.f32 %v204_v8, %v197_v56  ;;  %v275_v28 = vadd.f32 %v270_v11, %v263_v57 }
  0xad   :  { %v94_v9 = vpop.permute.xlu1 %93  ;;  %v141_v29 = vadd.f32 %v136_v12, %v129_v5  ;;  %v208_v30 = vadd.f32 %v203_v13, %v196_v6  ;;  %v274_v33 = vadd.f32 %v269_v18, %v262_v7 }
  0xae   :  { %v92_v14 = vpop.permute.xlu0 %91  ;;  %v139_v22 = vmul.f32 %v134_v41, %v94_v9  ;;  %v206_v24 = vmul.f32 %v201_v43, %v94_v9  ;;  %v272_v25 = vmul.f32 %v267_v44, %v94_v9 }
  0xaf   :  { %v138_v26 = vmul.f32 %v134_v41, %v92_v14  ;;  %v205_v31 = vmul.f32 %v201_v43, %v92_v14  ;;  %v271_v34 = vmul.f32 %v267_v44, %v92_v14 }
  0xb0   :  { %v144_v37 = vadd.f32 %v139_v22, %v132_v10  ;;  %v211_v41 = vadd.f32 %v206_v24, %v199_v16  ;;  %v277_v42 = vadd.f32 %v272_v25, %v265_v17 }
  0xb1   :  { %v109_v27 = vpop.permute.xlu1 %108  ;;  %v143_v51 = vadd.f32 %v138_v26, %v131_v62  ;;  %v210_v56 = vadd.f32 %v205_v31, %v198_v63  ;;  %v276_v60 = vadd.f32 %v271_v34, %v264_v1 }
  0xb2   :  { %v107_v32 = vpop.permute.xlu0 %106  ;;  %v148_v35 = vmul.f32 %v497_v45, %v109_v27  ;;  %v215_v36 = vmul.f32 %v499_v46, %v109_v27  ;;  %v281_v38 = vmul.f32 %v501_v47, %v109_v27 }
  0xb3   :  { %v147_v39 = vmul.f32 %v497_v45, %v107_v32  ;;  %v214_v40 = vmul.f32 %v499_v46, %v107_v32  ;;  %v280_v52 = vmul.f32 %v501_v47, %v107_v32 }
  0xb4   :  { %v153_v61 = vadd.f32 %v148_v35, %v141_v29  ;;  %v220_v0 = vadd.f32 %v215_v36, %v208_v30  ;;  %v286_v3 = vadd.f32 %v281_v38, %v274_v33 }
  0xb5   :  { %v113_v43 = vpop.permute.xlu1 %112  ;;  %v152_v4 = vadd.f32 %v147_v39, %v140_v15  ;;  %v219_v62 = vadd.f32 %v214_v40, %v207_v19  ;;  %v285_v6 = vadd.f32 %v280_v52, %v273_v20 }
  0xb6   :  { %v150_v44 = vmul.f32 %v497_v45, %v113_v43  ;;  %v217_v57 = vmul.f32 %v499_v46, %v113_v43  ;;  %v283_v58 = vmul.f32 %v501_v47, %v113_v43  ;;  %v111_v59 = vpop.permute.xlu0 %110 }
  0xb7   :  { %v149_v2 = vmul.f32 %v497_v45, %v111_v59  ;;  %v216_v5 = vmul.f32 %v499_v46, %v111_v59  ;;  %v282_v8 = vmul.f32 %v501_v47, %v111_v59 }
  0xb8   :  { %v526_v63 = vadd.f32 %v150_v44, %v143_v51  ;;  %v528_v7 = vadd.f32 %v217_v57, %v210_v56  ;;  %v531_v10 = vadd.f32 %v283_v58, %v276_v60 }
  0xb9   :  { %v117_v9 = vpop.permute.xlu1 %116  ;;  %v154_v14 = vadd.f32 %v149_v2, %v142_v21  ;;  %v221_v18 = vadd.f32 %v216_v5, %v209_v23  ;;  %v287_v24 = vadd.f32 %v282_v8, %v275_v28 }
  0xba   :  { %v159_v1 = vmul.f32 %v503_v48, %v117_v9  ;;  %v226_v11 = vmul.f32 %v505_v49, %v117_v9  ;;  %v292_v12 = vmul.f32 %v507_v50, %v117_v9  ;;  %v115_v13 = vpop.permute.xlu0 %114 }
  0xbb   :  { %v151_v15 = vmul.f32 %v497_v45, %v115_v13  ;;  %v218_v16 = vmul.f32 %v499_v46, %v115_v13  ;;  %v284_v17 = vmul.f32 %v501_v47, %v115_v13 }
  0xbc   :  { %v164_v19 = vadd.f32 %v159_v1, %v152_v4  ;;  %v231_v20 = vadd.f32 %v226_v11, %v219_v62  ;;  %v297_v22 = vadd.f32 %v292_v12, %v285_v6 }
  0xbd   :  { %v156_v25 = vadd.f32 %v151_v15, %v144_v37  ;;  %v223_v26 = vadd.f32 %v218_v16, %v211_v41  ;;  %v289_v27 = vadd.f32 %v284_v17, %v277_v42  ;;  %v121_v29 = vpop.permute.xlu1 %120 }
  0xbe   :  { %v171_v30 = vadd.f32 %v509_v53, %v164_v19  ;;  %v238_v31 = vadd.f32 %v511_v54, %v231_v20  ;;  %v304_v21 = vadd.f32 %v513_v55, %v297_v22  ;;  %v161_v45 = vmul.f32 %v503_v48, %v121_v29  ;;  %v119_v46 = vpop.permute.xlu0 %118 }
  0xbf   :  { %v228_v47 = vmul.f32 %v505_v49, %v121_v29  ;;  %v294_v23 = vmul.f32 %v507_v50, %v121_v29  ;;  %v160_v32 = vmul.f32 %v503_v48, %v119_v46  ;;  %v227_v28 = vmul.f32 %v505_v49, %v119_v46 }
  0xc0   :  { %v346_v33 = vclamps-f32 %v171_v30, 0.6  ;;  %v356_v34 = vclamps-f32 %v238_v31, 0.6  ;;  %v366_v35 = vclamps-f32 %v304_v21, 0.6  ;;  %v166_v36 = vadd.f32 %v161_v45, %v154_v14 }
  0xc1   :  { %v233_v37 = vadd.f32 %v228_v47, %v221_v18  ;;  %v299_v38 = vadd.f32 %v294_v23, %v287_v24  ;;  %v165_v39 = vadd.f32 %v160_v32, %v153_v61  ;;  %v232_v40 = vadd.f32 %v227_v28, %v220_v0  ;;  %v125_v41 = vpop.permute.xlu1 %124 }
  0xc2   :  { %187 = vst.msk [vmem:[#allocation8] sm:$0xff] %vm186_vm4, %v346_v33  ;;  %254 = vst.msk [vmem:[#allocation8 + $0x28] sm:$0xff] %vm186_vm4, %v356_v34  ;;  %v173_v42 = vadd.f32 %v509_v53, %v166_v36  ;;  %v293_v51 = vmul.f32 %v507_v50, %v119_v46  ;;  %v163_v52 = vmul.f32 %v503_v48, %v125_v41  ;;  %v123_v2 = vpop.permute.xlu0 %122 }
  0xc3   :  { %320 = vst.msk [vmem:[#allocation8 + $0x50] sm:$0xff] %vm186_vm4, %v366_v35  ;;  %v230_v43 = vmul.f32 %v505_v49, %v125_v41  ;;  %v240_v56 = vadd.f32 %v511_v54, %v233_v37  ;;  %v306_v44 = vadd.f32 %v513_v55, %v299_v38  ;;  %v172_v57 = vadd.f32 %v509_v53, %v165_v39 }
  0xc4   :  { %v239_v58 = vadd.f32 %v511_v54, %v232_v40  ;;  %v348_v59 = vclamps-f32 %v173_v42, 0.6  ;;  %v298_v60 = vadd.f32 %v293_v51, %v286_v3  ;;  %v168_v61 = vadd.f32 %v163_v52, %v156_v25 }
  0xc5   :  { %v235_v0 = vadd.f32 %v230_v43, %v223_v26  ;;  %v358_v4 = vclamps-f32 %v240_v56, 0.6  ;;  %v368_v62 = vclamps-f32 %v306_v44, 0.6  ;;  %v347_v5 = vclamps-f32 %v172_v57, 0.6 }
  0xc6   :  { %v296_v6 = vmul.f32 %v507_v50, %v125_v41  ;;  %189 = vst.msk [vmem:[#allocation8 + $0x10] sm:$0xff] %vm186_vm4, %v348_v59  ;;  %v357_v8 = vclamps-f32 %v239_v58, 0.6  ;;  %v305_v9 = vadd.f32 %v513_v55, %v298_v60  ;;  %v175_v1 = vadd.f32 %v509_v53, %v168_v61 }
  0xc7   :  { %v242_v11 = vadd.f32 %v511_v54, %v235_v0  ;;  %256 = vst.msk [vmem:[#allocation8 + $0x38] sm:$0xff] %vm186_vm4, %v358_v4  ;;  %322 = vst.msk [vmem:[#allocation8 + $0x60] sm:$0xff] %vm186_vm4, %v368_v62  ;;  %v162_v12 = vmul.f32 %v503_v48, %v123_v2  ;;  %v229_v13 = vmul.f32 %v505_v49, %v123_v2 }
  0xc8   :  { %188 = vst.msk [vmem:[#allocation8 + $0x8] sm:$0xff] %vm186_vm4, %v347_v5  ;;  %v301_v3 = vadd.f32 %v296_v6, %v289_v27  ;;  %v295_v14 = vmul.f32 %v507_v50, %v123_v2  ;;  %255 = vst.msk [vmem:[#allocation8 + $0x30] sm:$0xff] %vm186_vm4, %v357_v8  ;;  %v367_v15 = vclamps-f32 %v305_v9, 0.6  ;;  %v350_v16 = vclamps-f32 %v175_v1, 0.6 }
  0xc9   :  { %v360_v17 = vclamps-f32 %v242_v11, 0.6  ;;  %v167_v19 = vadd.f32 %v162_v12, %v526_v63  ;;  %v234_v20 = vadd.f32 %v229_v13, %v528_v7 }
  0xca   :  { %v308_v18 = vadd.f32 %v513_v55, %v301_v3  ;;  %v300_v22 = vadd.f32 %v295_v14, %v531_v10  ;;  %321 = vst.msk [vmem:[#allocation8 + $0x58] sm:$0xff] %vm186_vm4, %v367_v15 }
  0xcb   :  { %192 = vst.msk [vmem:[#allocation8 + $0x20] sm:$0x3f] %vm191_vm5, %v350_v16  ;;  %258 = vst.msk [vmem:[#allocation8 + $0x48] sm:$0x3f] %vm191_vm5, %v360_v17  ;;  %v174_v49 = vadd.f32 %v509_v53, %v167_v19  ;;  %v241_v50 = vadd.f32 %v511_v54, %v234_v20 }
  0xcc   :  { %v370_v48 = vclamps-f32 %v308_v18, 0.6  ;;  %v307_v24 = vadd.f32 %v513_v55, %v300_v22 }
  0xcd   :  { %v349_v63 = vclamps-f32 %v174_v49, 0.6  ;;  %v359_v7 = vclamps-f32 %v241_v50, 0.6 }
  0xce   :  { %324 = vst.msk [vmem:[#allocation8 + $0x70] sm:$0x3f] %vm191_vm5, %v370_v48  ;;  %v369_v10 = vclamps-f32 %v307_v24, 0.6 }
  0xcf   :  { %190 = vst.msk [vmem:[#allocation8 + $0x18] sm:$0xff] %vm186_vm4, %v349_v63  ;;  %257 = vst.msk [vmem:[#allocation8 + $0x40] sm:$0xff] %vm186_vm4, %v359_v7 }
  0xd0   :  { %323 = vst.msk [vmem:[#allocation8 + $0x68] sm:$0xff] %vm186_vm4, %v369_v10 }
  0xd1   :  { %414 = shalt.err (!%p411_p0)
}
  0xd2   :  { %s435_s1 = smov 128   ;;  %s436_s21 = smov 8  }
  0xd3   :  { %336 = dma.vmem_to_hbm [thread:$0]  %s331_s20, 1920, %s590_s3, [#allocation4], %s435_s1, %s435_s1, %s436_s21  }
  0xd4   :  { %427 = dma.done.wait [#allocation4], 1920  }
  0xd5   :  { %428 = vsyncadd [#allocation4], 4294965376 }
  0xd6   :  { %340 = vsyncpa [#allocation4], 1 }
  0xd7   :  { %341 = vsyncpa [#allocation5], 1 }
  0xd8   :  { %342 = vsyncpa [#allocation7], 1 }

</bundles_post_ra>
